<compile_context>
chip_gen: v7x
topology: tpu7x:2x2x1
jax: 0.10.0
libtpu: 0.0.40
codegen_flags: <defaults>
</compile_context>

<pallas_src>
import functools
import math

import jax
import jax.numpy as jnp
from jax.experimental import pallas as pl
from jax.experimental.pallas import tpu as pltpu


def _attn_block_kernel(x_ref, wqkv_ref, bqkv_ref, wo_ref, bo_ref, g_ref, beta_ref,
                       o_ref, oconcat_ref, *, num_heads: int, kv_tile: int):
    Bb, S, E = x_ref.shape
    H = num_heads
    Dh = E // H
    R = Bb * S
    n_kv = S // kv_tile

    x = x_ref[...]                       # (Bb, S, E) f32
    x2 = x.reshape(R, E)                 # leading-dim merge (S % 8 == 0 or Bb == 1)

    # --- fused QKV projection: one wide (R,E)@(E,3E) bf16 MXU matmul (f32 acc) ---
    # 1/sqrt(Dh) is pre-folded into the Q columns of wqkv / bqkv on the host.
    qkv = jnp.dot(x2.astype(jnp.bfloat16), wqkv_ref[...],
                  preferred_element_type=jnp.float32) + bqkv_ref[...]   # (R, 3E) f32

    # --- per-(batch-row, head) attention, consuming lane slices of qkv directly ---
    # KV processed in kv_tile chunks with online (flash) softmax; n_kv == 1 == dense.
    for b in range(Bb):
        r0 = b * S
        for h in range(H):
            c0 = h * Dh

            def kv(c, base, r0=r0, c0=c0):
                rr = r0 + c * kv_tile
                return qkv[rr:rr + kv_tile,
                           base + c0:base + c0 + Dh].astype(jnp.bfloat16)

            q = qkv[r0:r0 + S, c0:c0 + Dh].astype(jnp.bfloat16)          # (S, Dh)

            # chunk 0 initializes running max / denominator / accumulator
            s = jnp.dot(q, kv(0, E).T, preferred_element_type=jnp.float32)  # (S, kv_tile)
            m = jnp.max(s, axis=-1, keepdims=True)
            p = jnp.exp(s - m)
            l = jnp.sum(p, axis=-1, keepdims=True)
            acc = jnp.dot(p.astype(jnp.bfloat16), kv(0, 2 * E),
                          preferred_element_type=jnp.float32)               # (S, Dh)
            for c in range(1, n_kv):
                s = jnp.dot(q, kv(c, E).T, preferred_element_type=jnp.float32)
                m_new = jnp.maximum(m, jnp.max(s, axis=-1, keepdims=True))
                alpha = jnp.exp(m - m_new)
                p = jnp.exp(s - m_new)
                l = alpha * l + jnp.sum(p, axis=-1, keepdims=True)
                acc = alpha * acc + jnp.dot(p.astype(jnp.bfloat16), kv(c, 2 * E),
                                            preferred_element_type=jnp.float32)
                m = m_new

            o_h = acc * pl.reciprocal(l, approx=True)     # normalize after PV (EUP)
            # write this head's output into its Dh-wide lane slice (no stack / concat)
            oconcat_ref[r0:r0 + S, c0:c0 + Dh] = o_h.astype(jnp.bfloat16)

    # --- output projection: ONE (R,E)@(E,E) MXU matmul (K = E, full MXU width) ---
    attn = jnp.dot(oconcat_ref[...], wo_ref[...],
                   preferred_element_type=jnp.float32) + bo_ref[...]        # (R, E)

    # --- residual + LayerNorm (f32; dropout == identity in eval mode) ---
    y = x2 + attn
    mu = jnp.mean(y, axis=-1, keepdims=True)
    var = jnp.mean(y * y, axis=-1, keepdims=True) - mu * mu     # one-pass variance
    out = (y - mu) * jax.lax.rsqrt(var + 1e-5) * g_ref[...] + beta_ref[...]
    o_ref[...] = out.reshape(Bb, S, E).astype(o_ref.dtype)


def _vmem_capacity_bytes():
    try:
        return int(pltpu.get_tpu_info().vmem_capacity_bytes)
    except Exception:
        return 64 * 1024 * 1024          # conservative default (v7x: 64 MiB per TC)


def _pick_kv_tile(S):
    if S <= 512:
        return S
    for t in (512, 384, 256, 128):       # prefer lane-aligned tiles that divide S
        if S % t == 0:
            return t
    best = 1
    for d in range(1, 513):
        if S % d == 0:
            best = d
    return best


def _block_vmem_bytes(bb, S, E, H, kv_tile):
    R = bb * S
    x_io = 2 * 2 * R * E * 4                     # double-buffered x and out blocks (f32)
    qkv = R * 3 * E * 4                          # fused QKV activation (f32)
    o_scr = R * E * 2                            # bf16 head-concat scratch
    ln = 2 * R * E * 4                           # residual / LayerNorm temporaries (f32)
    attn_tmp = 4 * S * kv_tile * 4 + S * max(E // H, 1) * 4   # live per-head temps
    weights = 2 * (3 * E * E + E * E) * 2        # double-buffered bf16 weights
    return x_io + qkv + o_scr + ln + attn_tmp + weights


def _pick_block_b(B, S, E, H, kv_tile, block_budget_bytes):
    best = 1
    n_kv = max(S // kv_tile, 1)
    for d in range(1, B + 1):
        if B % d:
            continue
        if d > 1 and S % 8:
            continue                 # keep the (Bb,S,E)->(Bb*S,E) flatten sublane-aligned
        if B >= 2 and B // d < 2:
            continue                 # >= 2 grid steps: v7x has 2 TCs; also pipelining
        if d * H * n_kv > 256:
            continue                 # bound static unroll / trace size
        if _block_vmem_bytes(d, S, E, H, kv_tile) > block_budget_bytes:
            continue
        best = d
    return best


def attention_block(x, params, *, num_heads: int, block_b=None, kv_tile=None):
    """x: (B, S, E) float32.  params: dict from init_params (fused / pre-transposed)."""
    B, S, E = x.shape
    H = num_heads
    Dh = E // H
    assert Dh * H == E

    # Fold 1/sqrt(Dh) into the Q columns of the fused QKV weight & bias (one-time,
    # host-side weight transform; not an activation pre-scale).
    scale = 1.0 / math.sqrt(Dh)
    col_scale = jnp.concatenate(
        [jnp.full((E,), scale, jnp.float32), jnp.ones((2 * E,), jnp.float32)])
    wqkv = (params["wqkv"] * col_scale[None, :]).astype(jnp.bfloat16)   # (E, 3E) bf16
    bqkv = params["bqkv"] * col_scale[None, :]                          # (1, 3E) f32
    wo = params["wo"].astype(jnp.bfloat16)                              # (E, E) bf16

    # Generation-aware sizing from actual VMEM capacity (v5e/v6e 128 MiB, v7x 64 MiB).
    cap = _vmem_capacity_bytes()
    vmem_limit = int(min(100 * 1024 * 1024, (cap * 3) // 4))
    block_budget = (vmem_limit * 3) // 5

    if kv_tile is None:
        kv_tile = _pick_kv_tile(S)
    assert S % kv_tile == 0
    if block_b is None:
        block_b = _pick_block_b(B, S, E, H, kv_tile, block_budget)
    assert B % block_b == 0
    nb = B // block_b

    kernel = functools.partial(_attn_block_kernel, num_heads=H, kv_tile=kv_tile)

    return pl.pallas_call(
        kernel,
        out_shape=jax.ShapeDtypeStruct((B, S, E), x.dtype),
        grid_spec=pltpu.PrefetchScalarGridSpec(
            num_scalar_prefetch=0,
            grid=(nb,),
            in_specs=[
                pl.BlockSpec((block_b, S, E), lambda b: (b, 0, 0)),   # x
                pl.BlockSpec((E, 3 * E), lambda b: (0, 0)),           # wqkv (bf16, Q scaled)
                pl.BlockSpec((1, 3 * E), lambda b: (0, 0)),           # bqkv (f32, Q scaled)
                pl.BlockSpec((E, E), lambda b: (0, 0)),               # wo (bf16)
                pl.BlockSpec((1, E), lambda b: (0, 0)),               # bo
                pl.BlockSpec((1, E), lambda b: (0, 0)),               # gamma
                pl.BlockSpec((1, E), lambda b: (0, 0)),               # beta
            ],
            out_specs=pl.BlockSpec((block_b, S, E), lambda b: (b, 0, 0)),
            scratch_shapes=[pltpu.VMEM((block_b * S, E), jnp.bfloat16)],  # head concat
        ),
        compiler_params=pltpu.CompilerParams(
            dimension_semantics=("parallel",),
            vmem_limit_bytes=vmem_limit),
    )(x, wqkv, bqkv, wo, params["bo"], params["gamma"], params["beta"])


def init_params(key, embed_dim):
    """Deterministic synthetic params matching nn.MultiheadAttention + LayerNorm shapes."""
    E = embed_dim
    k1, k2, k3, k4 = jax.random.split(key, 4)
    in_proj_w = jax.random.normal(k1, (3 * E, E), jnp.float32) * 0.05   # (3E, E)
    in_proj_b = jax.random.normal(k2, (3 * E,), jnp.float32) * 0.02
    out_proj_w = jax.random.normal(k3, (E, E), jnp.float32) * 0.05
    out_proj_b = jax.random.normal(k4, (E,), jnp.float32) * 0.02
    return {
        # pre-transpose so the kernel does x @ w; QKV fused into one (E, 3E) matrix
        "wqkv": in_proj_w.T,                      # (E, 3E): cols = [q | k | v]
        "bqkv": in_proj_b.reshape(1, 3 * E),
        "wo": out_proj_w.T,                       # (E, E)
        "bo": out_proj_b.reshape(1, E),
        "gamma": jnp.ones((1, E), jnp.float32),   # LayerNorm weight
        "beta": jnp.zeros((1, E), jnp.float32),   # LayerNorm bias
    }


def attention_block_ref(x, params, *, num_heads: int):
    """Pure-JAX f32 reference mirroring the PyTorch module (eval mode)."""
    B, S, E = x.shape
    H = num_heads
    Dh = E // H
    qkv = jnp.einsum('bse,ef->bsf', x, params["wqkv"]) + params["bqkv"][0]
    q, k, v = qkv[..., :E], qkv[..., E:2 * E], qkv[..., 2 * E:]

    def split(t):
        return t.reshape(B, S, H, Dh).transpose(0, 2, 1, 3)   # (B, H, S, Dh)

    qh, kh, vh = split(q), split(k), split(v)
    s = jnp.einsum('bhqd,bhkd->bhqk', qh, kh) / math.sqrt(Dh)
    p = jax.nn.softmax(s, axis=-1)
    o = jnp.einsum('bhqk,bhkd->bhqd', p, vh)
    o = o.transpose(0, 2, 1, 3).reshape(B, S, E)
    attn = jnp.einsum('bse,ef->bsf', o, params["wo"]) + params["bo"][0]
    y = x + attn
    mu = y.mean(-1, keepdims=True)
    var = ((y - mu) ** 2).mean(-1, keepdims=True)
    return (y - mu) * jax.lax.rsqrt(var + 1e-5) * params["gamma"][0] + params["beta"][0]


if __name__ == "__main__":
    B, S, E, H = 2, 8, 32, 4
    key = jax.random.PRNGKey(0)
    kx, kp = jax.random.split(key)
    x = jax.random.normal(kx, (B, S, E), jnp.float32)
    params = init_params(kp, E)

    out = attention_block(x, params, num_heads=H)
    jax.block_until_ready(out)
    assert out.shape == (B, S, E)

    ref = attention_block_ref(x, params, num_heads=H)
    err = float(jnp.max(jnp.abs(out - ref)))
    assert err < 3e-2, f"max abs err vs f32 reference: {err}"
    print("KERNEL_OK")
</pallas_src>

<mosaic_0001>
module attributes {stable_mosaic.version = 11 : i64} {
  func.func @_attn_block_kernel(%arg0: i32, %arg1: memref<1x8x32xf32, #tpu.memory_space<vmem>>, %arg2: memref<32x96xbf16, #tpu.memory_space<vmem>>, %arg3: memref<1x96xf32, #tpu.memory_space<vmem>>, %arg4: memref<32x32xbf16, #tpu.memory_space<vmem>>, %arg5: memref<1x32xf32, #tpu.memory_space<vmem>>, %arg6: memref<1x32xf32, #tpu.memory_space<vmem>>, %arg7: memref<1x32xf32, #tpu.memory_space<vmem>>, %arg8: memref<1x8x32xf32, #tpu.memory_space<vmem>>, %arg9: memref<8x32xbf16, #tpu.memory_space<vmem>>) attributes {dimension_semantics = [#tpu.dimension_semantics<parallel>], iteration_bounds = array<i64: 2>, scalar_prefetch = 0 : i64, scratch_operands = 1 : i64, tpu.core_type = #tpu.core_type<tc>, window_params = [{transform_indices = @transform_0, window_bounds = array<i64: 1, 8, 32>}, {pipeline_mode = #tpu.pipeline_mode<synchronous>, transform_indices = @transform_1, window_bounds = array<i64: 32, 96>}, {pipeline_mode = #tpu.pipeline_mode<synchronous>, transform_indices = @transform_2, window_bounds = array<i64: 1, 96>}, {pipeline_mode = #tpu.pipeline_mode<synchronous>, transform_indices = @transform_3, window_bounds = array<i64: 32, 32>}, {pipeline_mode = #tpu.pipeline_mode<synchronous>, transform_indices = @transform_4, window_bounds = array<i64: 1, 32>}, {pipeline_mode = #tpu.pipeline_mode<synchronous>, transform_indices = @transform_5, window_bounds = array<i64: 1, 32>}, {pipeline_mode = #tpu.pipeline_mode<synchronous>, transform_indices = @transform_6, window_bounds = array<i64: 1, 32>}, {transform_indices = @transform_7, window_bounds = array<i64: 1, 8, 32>}]} {
    %c0 = arith.constant 0 : index
    %c0_0 = arith.constant 0 : index
    %c0_1 = arith.constant 0 : index
    %0 = vector.load %arg1[%c0, %c0_0, %c0_1] : memref<1x8x32xf32, #tpu.memory_space<vmem>>, vector<1x8x32xf32>
    %1 = vector.shape_cast %0 : vector<1x8x32xf32> to vector<8x32xf32>
    %2 = arith.truncf %1 : vector<8x32xf32> to vector<8x32xbf16>
    %c0_2 = arith.constant 0 : index
    %c0_3 = arith.constant 0 : index
    %3 = vector.load %arg2[%c0_2, %c0_3] : memref<32x96xbf16, #tpu.memory_space<vmem>>, vector<32x96xbf16>
    %cst = arith.constant dense<0.000000e+00> : vector<8x96xf32>
    %4 = tpu.matmul %2, %3, %cst {dimension_numbers = #tpu.dot_dimension_numbers<[1], [0], [0], [1], [0, 0, 1, 1], [], []>} : vector<8x32xbf16>, vector<32x96xbf16>, vector<8x96xf32> -> vector<8x96xf32>
    %c0_4 = arith.constant 0 : index
    %c0_5 = arith.constant 0 : index
    %5 = vector.load %arg3[%c0_4, %c0_5] : memref<1x96xf32, #tpu.memory_space<vmem>>, vector<1x96xf32>
    %6 = vector.broadcast %5 : vector<1x96xf32> to vector<8x96xf32>
    %7 = arith.addf %4, %6 : vector<8x96xf32>
    %8 = vector.extract_strided_slice %7 {offsets = [0, 0], sizes = [8, 8], strides = [1, 1]} : vector<8x96xf32> to vector<8x8xf32>
    %9 = arith.truncf %8 : vector<8x8xf32> to vector<8x8xbf16>
    %10 = vector.extract_strided_slice %7 {offsets = [0, 32], sizes = [8, 8], strides = [1, 1]} : vector<8x96xf32> to vector<8x8xf32>
    %11 = arith.truncf %10 : vector<8x8xf32> to vector<8x8xbf16>
    %12 = tpu.transpose %11, [1, 0] : vector<8x8xbf16> -> vector<8x8xbf16>
    %cst_6 = arith.constant dense<0.000000e+00> : vector<8x8xf32>
    %13 = tpu.matmul %9, %12, %cst_6 {dimension_numbers = #tpu.dot_dimension_numbers<[1], [0], [0], [1], [0, 0, 1, 1], [], []>} : vector<8x8xbf16>, vector<8x8xbf16>, vector<8x8xf32> -> vector<8x8xf32>
    %cst_7 = arith.constant dense<0xFF800000> : vector<8xf32>
    %14 = vector.multi_reduction <maximumf>, %13, %cst_7 [1] : vector<8x8xf32> to vector<8xf32>
    %15 = vector.shape_cast %14 : vector<8xf32> to vector<8x1xf32>
    %16 = vector.broadcast %15 : vector<8x1xf32> to vector<8x8xf32>
    %17 = arith.subf %13, %16 : vector<8x8xf32>
    %18 = math.exp %17 : vector<8x8xf32>
    %cst_8 = arith.constant dense<0.000000e+00> : vector<8xf32>
    %19 = vector.multi_reduction <add>, %18, %cst_8 [1] : vector<8x8xf32> to vector<8xf32>
    %20 = vector.shape_cast %19 : vector<8xf32> to vector<8x1xf32>
    %21 = arith.truncf %18 : vector<8x8xf32> to vector<8x8xbf16>
    %22 = vector.extract_strided_slice %7 {offsets = [0, 64], sizes = [8, 8], strides = [1, 1]} : vector<8x96xf32> to vector<8x8xf32>
    %23 = arith.truncf %22 : vector<8x8xf32> to vector<8x8xbf16>
    %cst_9 = arith.constant dense<0.000000e+00> : vector<8x8xf32>
    %24 = tpu.matmul %21, %23, %cst_9 {dimension_numbers = #tpu.dot_dimension_numbers<[1], [0], [0], [1], [0, 0, 1, 1], [], []>} : vector<8x8xbf16>, vector<8x8xbf16>, vector<8x8xf32> -> vector<8x8xf32>
    %25 = tpu.reciprocal %20 {approx = true} : vector<8x1xf32> -> vector<8x1xf32>
    %26 = vector.broadcast %25 : vector<8x1xf32> to vector<8x8xf32>
    %27 = arith.mulf %24, %26 : vector<8x8xf32>
    %28 = arith.truncf %27 : vector<8x8xf32> to vector<8x8xbf16>
    %c0_10 = arith.constant 0 : index
    %c0_11 = arith.constant 0 : index
    %29 = vector.load %arg9[%c0_10, %c0_11] : memref<8x32xbf16, #tpu.memory_space<vmem>>, vector<8x8xbf16>
    tpu.vector_store %arg9[%c0_10, %c0_11], %28 {strides = array<i32>} : memref<8x32xbf16, #tpu.memory_space<vmem>>, vector<8x8xbf16>,
    %30 = vector.extract_strided_slice %7 {offsets = [0, 8], sizes = [8, 8], strides = [1, 1]} : vector<8x96xf32> to vector<8x8xf32>
    %31 = arith.truncf %30 : vector<8x8xf32> to vector<8x8xbf16>
    %32 = vector.extract_strided_slice %7 {offsets = [0, 40], sizes = [8, 8], strides = [1, 1]} : vector<8x96xf32> to vector<8x8xf32>
    %33 = arith.truncf %32 : vector<8x8xf32> to vector<8x8xbf16>
    %34 = tpu.transpose %33, [1, 0] : vector<8x8xbf16> -> vector<8x8xbf16>
    %cst_12 = arith.constant dense<0.000000e+00> : vector<8x8xf32>
    %35 = tpu.matmul %31, %34, %cst_12 {dimension_numbers = #tpu.dot_dimension_numbers<[1], [0], [0], [1], [0, 0, 1, 1], [], []>} : vector<8x8xbf16>, vector<8x8xbf16>, vector<8x8xf32> -> vector<8x8xf32>
    %cst_13 = arith.constant dense<0xFF800000> : vector<8xf32>
    %36 = vector.multi_reduction <maximumf>, %35, %cst_13 [1] : vector<8x8xf32> to vector<8xf32>
    %37 = vector.shape_cast %36 : vector<8xf32> to vector<8x1xf32>
    %38 = vector.broadcast %37 : vector<8x1xf32> to vector<8x8xf32>
    %39 = arith.subf %35, %38 : vector<8x8xf32>
    %40 = math.exp %39 : vector<8x8xf32>
    %cst_14 = arith.constant dense<0.000000e+00> : vector<8xf32>
    %41 = vector.multi_reduction <add>, %40, %cst_14 [1] : vector<8x8xf32> to vector<8xf32>
    %42 = vector.shape_cast %41 : vector<8xf32> to vector<8x1xf32>
    %43 = arith.truncf %40 : vector<8x8xf32> to vector<8x8xbf16>
    %44 = vector.extract_strided_slice %7 {offsets = [0, 72], sizes = [8, 8], strides = [1, 1]} : vector<8x96xf32> to vector<8x8xf32>
    %45 = arith.truncf %44 : vector<8x8xf32> to vector<8x8xbf16>
    %cst_15 = arith.constant dense<0.000000e+00> : vector<8x8xf32>
    %46 = tpu.matmul %43, %45, %cst_15 {dimension_numbers = #tpu.dot_dimension_numbers<[1], [0], [0], [1], [0, 0, 1, 1], [], []>} : vector<8x8xbf16>, vector<8x8xbf16>, vector<8x8xf32> -> vector<8x8xf32>
    %47 = tpu.reciprocal %42 {approx = true} : vector<8x1xf32> -> vector<8x1xf32>
    %48 = vector.broadcast %47 : vector<8x1xf32> to vector<8x8xf32>
    %49 = arith.mulf %46, %48 : vector<8x8xf32>
    %50 = arith.truncf %49 : vector<8x8xf32> to vector<8x8xbf16>
    %c0_16 = arith.constant 0 : index
    %c8 = arith.constant 8 : index
    %51 = vector.load %arg9[%c0_16, %c8] : memref<8x32xbf16, #tpu.memory_space<vmem>>, vector<8x8xbf16>
    tpu.vector_store %arg9[%c0_16, %c8], %50 {strides = array<i32>} : memref<8x32xbf16, #tpu.memory_space<vmem>>, vector<8x8xbf16>,
    %52 = vector.extract_strided_slice %7 {offsets = [0, 16], sizes = [8, 8], strides = [1, 1]} : vector<8x96xf32> to vector<8x8xf32>
    %53 = arith.truncf %52 : vector<8x8xf32> to vector<8x8xbf16>
    %54 = vector.extract_strided_slice %7 {offsets = [0, 48], sizes = [8, 8], strides = [1, 1]} : vector<8x96xf32> to vector<8x8xf32>
    %55 = arith.truncf %54 : vector<8x8xf32> to vector<8x8xbf16>
    %56 = tpu.transpose %55, [1, 0] : vector<8x8xbf16> -> vector<8x8xbf16>
    %cst_17 = arith.constant dense<0.000000e+00> : vector<8x8xf32>
    %57 = tpu.matmul %53, %56, %cst_17 {dimension_numbers = #tpu.dot_dimension_numbers<[1], [0], [0], [1], [0, 0, 1, 1], [], []>} : vector<8x8xbf16>, vector<8x8xbf16>, vector<8x8xf32> -> vector<8x8xf32>
    %cst_18 = arith.constant dense<0xFF800000> : vector<8xf32>
    %58 = vector.multi_reduction <maximumf>, %57, %cst_18 [1] : vector<8x8xf32> to vector<8xf32>
    %59 = vector.shape_cast %58 : vector<8xf32> to vector<8x1xf32>
    %60 = vector.broadcast %59 : vector<8x1xf32> to vector<8x8xf32>
    %61 = arith.subf %57, %60 : vector<8x8xf32>
    %62 = math.exp %61 : vector<8x8xf32>
    %cst_19 = arith.constant dense<0.000000e+00> : vector<8xf32>
    %63 = vector.multi_reduction <add>, %62, %cst_19 [1] : vector<8x8xf32> to vector<8xf32>
    %64 = vector.shape_cast %63 : vector<8xf32> to vector<8x1xf32>
    %65 = arith.truncf %62 : vector<8x8xf32> to vector<8x8xbf16>
    %66 = vector.extract_strided_slice %7 {offsets = [0, 80], sizes = [8, 8], strides = [1, 1]} : vector<8x96xf32> to vector<8x8xf32>
    %67 = arith.truncf %66 : vector<8x8xf32> to vector<8x8xbf16>
    %cst_20 = arith.constant dense<0.000000e+00> : vector<8x8xf32>
    %68 = tpu.matmul %65, %67, %cst_20 {dimension_numbers = #tpu.dot_dimension_numbers<[1], [0], [0], [1], [0, 0, 1, 1], [], []>} : vector<8x8xbf16>, vector<8x8xbf16>, vector<8x8xf32> -> vector<8x8xf32>
    %69 = tpu.reciprocal %64 {approx = true} : vector<8x1xf32> -> vector<8x1xf32>
    %70 = vector.broadcast %69 : vector<8x1xf32> to vector<8x8xf32>
    %71 = arith.mulf %68, %70 : vector<8x8xf32>
    %72 = arith.truncf %71 : vector<8x8xf32> to vector<8x8xbf16>
    %c0_21 = arith.constant 0 : index
    %c16 = arith.constant 16 : index
    %73 = vector.load %arg9[%c0_21, %c16] : memref<8x32xbf16, #tpu.memory_space<vmem>>, vector<8x8xbf16>
    tpu.vector_store %arg9[%c0_21, %c16], %72 {strides = array<i32>} : memref<8x32xbf16, #tpu.memory_space<vmem>>, vector<8x8xbf16>,
    %74 = vector.extract_strided_slice %7 {offsets = [0, 24], sizes = [8, 8], strides = [1, 1]} : vector<8x96xf32> to vector<8x8xf32>
    %75 = arith.truncf %74 : vector<8x8xf32> to vector<8x8xbf16>
    %76 = vector.extract_strided_slice %7 {offsets = [0, 56], sizes = [8, 8], strides = [1, 1]} : vector<8x96xf32> to vector<8x8xf32>
    %77 = arith.truncf %76 : vector<8x8xf32> to vector<8x8xbf16>
    %78 = tpu.transpose %77, [1, 0] : vector<8x8xbf16> -> vector<8x8xbf16>
    %cst_22 = arith.constant dense<0.000000e+00> : vector<8x8xf32>
    %79 = tpu.matmul %75, %78, %cst_22 {dimension_numbers = #tpu.dot_dimension_numbers<[1], [0], [0], [1], [0, 0, 1, 1], [], []>} : vector<8x8xbf16>, vector<8x8xbf16>, vector<8x8xf32> -> vector<8x8xf32>
    %cst_23 = arith.constant dense<0xFF800000> : vector<8xf32>
    %80 = vector.multi_reduction <maximumf>, %79, %cst_23 [1] : vector<8x8xf32> to vector<8xf32>
    %81 = vector.shape_cast %80 : vector<8xf32> to vector<8x1xf32>
    %82 = vector.broadcast %81 : vector<8x1xf32> to vector<8x8xf32>
    %83 = arith.subf %79, %82 : vector<8x8xf32>
    %84 = math.exp %83 : vector<8x8xf32>
    %cst_24 = arith.constant dense<0.000000e+00> : vector<8xf32>
    %85 = vector.multi_reduction <add>, %84, %cst_24 [1] : vector<8x8xf32> to vector<8xf32>
    %86 = vector.shape_cast %85 : vector<8xf32> to vector<8x1xf32>
    %87 = arith.truncf %84 : vector<8x8xf32> to vector<8x8xbf16>
    %88 = vector.extract_strided_slice %7 {offsets = [0, 88], sizes = [8, 8], strides = [1, 1]} : vector<8x96xf32> to vector<8x8xf32>
    %89 = arith.truncf %88 : vector<8x8xf32> to vector<8x8xbf16>
    %cst_25 = arith.constant dense<0.000000e+00> : vector<8x8xf32>
    %90 = tpu.matmul %87, %89, %cst_25 {dimension_numbers = #tpu.dot_dimension_numbers<[1], [0], [0], [1], [0, 0, 1, 1], [], []>} : vector<8x8xbf16>, vector<8x8xbf16>, vector<8x8xf32> -> vector<8x8xf32>
    %91 = tpu.reciprocal %86 {approx = true} : vector<8x1xf32> -> vector<8x1xf32>
    %92 = vector.broadcast %91 : vector<8x1xf32> to vector<8x8xf32>
    %93 = arith.mulf %90, %92 : vector<8x8xf32>
    %94 = arith.truncf %93 : vector<8x8xf32> to vector<8x8xbf16>
    %c0_26 = arith.constant 0 : index
    %c24 = arith.constant 24 : index
    %95 = vector.load %arg9[%c0_26, %c24] : memref<8x32xbf16, #tpu.memory_space<vmem>>, vector<8x8xbf16>
    tpu.vector_store %arg9[%c0_26, %c24], %94 {strides = array<i32>} : memref<8x32xbf16, #tpu.memory_space<vmem>>, vector<8x8xbf16>,
    %c0_27 = arith.constant 0 : index
    %c0_28 = arith.constant 0 : index
    %96 = vector.load %arg9[%c0_27, %c0_28] : memref<8x32xbf16, #tpu.memory_space<vmem>>, vector<8x32xbf16>
    %c0_29 = arith.constant 0 : index
    %c0_30 = arith.constant 0 : index
    %97 = vector.load %arg4[%c0_29, %c0_30] : memref<32x32xbf16, #tpu.memory_space<vmem>>, vector<32x32xbf16>
    %cst_31 = arith.constant dense<0.000000e+00> : vector<8x32xf32>
    %98 = tpu.matmul %96, %97, %cst_31 {dimension_numbers = #tpu.dot_dimension_numbers<[1], [0], [0], [1], [0, 0, 1, 1], [], []>} : vector<8x32xbf16>, vector<32x32xbf16>, vector<8x32xf32> -> vector<8x32xf32>
    %c0_32 = arith.constant 0 : index
    %c0_33 = arith.constant 0 : index
    %99 = vector.load %arg5[%c0_32, %c0_33] : memref<1x32xf32, #tpu.memory_space<vmem>>, vector<1x32xf32>
    %100 = vector.broadcast %99 : vector<1x32xf32> to vector<8x32xf32>
    %101 = arith.addf %98, %100 : vector<8x32xf32>
    %102 = arith.addf %1, %101 : vector<8x32xf32>
    %cst_34 = arith.constant dense<0.000000e+00> : vector<8xf32>
    %103 = vector.multi_reduction <add>, %102, %cst_34 [1] : vector<8x32xf32> to vector<8xf32>
    %104 = vector.shape_cast %103 : vector<8xf32> to vector<8x1xf32>
    %cst_35 = arith.constant 3.200000e+01 : f32
    %105 = vector.broadcast %cst_35 : f32 to vector<8x1xf32>
    %106 = arith.divf %104, %105 : vector<8x1xf32>
    %107 = arith.mulf %102, %102 : vector<8x32xf32>
    %cst_36 = arith.constant dense<0.000000e+00> : vector<8xf32>
    %108 = vector.multi_reduction <add>, %107, %cst_36 [1] : vector<8x32xf32> to vector<8xf32>
    %109 = vector.shape_cast %108 : vector<8xf32> to vector<8x1xf32>
    %cst_37 = arith.constant 3.200000e+01 : f32
    %110 = vector.broadcast %cst_37 : f32 to vector<8x1xf32>
    %111 = arith.divf %109, %110 : vector<8x1xf32>
    %112 = arith.mulf %106, %106 : vector<8x1xf32>
    %113 = arith.subf %111, %112 : vector<8x1xf32>
    %114 = vector.broadcast %106 : vector<8x1xf32> to vector<8x32xf32>
    %115 = arith.subf %102, %114 : vector<8x32xf32>
    %cst_38 = arith.constant 9.99999974E-6 : f32
    %116 = vector.broadcast %cst_38 : f32 to vector<8x1xf32>
    %117 = arith.addf %113, %116 : vector<8x1xf32>
    %118 = math.rsqrt %117 : vector<8x1xf32>
    %119 = vector.broadcast %118 : vector<8x1xf32> to vector<8x32xf32>
    %120 = arith.mulf %115, %119 : vector<8x32xf32>
    %c0_39 = arith.constant 0 : index
    %c0_40 = arith.constant 0 : index
    %121 = vector.load %arg6[%c0_39, %c0_40] : memref<1x32xf32, #tpu.memory_space<vmem>>, vector<1x32xf32>
    %122 = vector.broadcast %121 : vector<1x32xf32> to vector<8x32xf32>
    %123 = arith.mulf %120, %122 : vector<8x32xf32>
    %c0_41 = arith.constant 0 : index
    %c0_42 = arith.constant 0 : index
    %124 = vector.load %arg7[%c0_41, %c0_42] : memref<1x32xf32, #tpu.memory_space<vmem>>, vector<1x32xf32>
    %125 = vector.broadcast %124 : vector<1x32xf32> to vector<8x32xf32>
    %126 = arith.addf %123, %125 : vector<8x32xf32>
    %127 = vector.shape_cast %126 : vector<8x32xf32> to vector<1x8x32xf32>
    %c0_43 = arith.constant 0 : index
    %c0_44 = arith.constant 0 : index
    %c0_45 = arith.constant 0 : index
    %128 = vector.load %arg8[%c0_43, %c0_44, %c0_45] : memref<1x8x32xf32, #tpu.memory_space<vmem>>, vector<1x8x32xf32>
    tpu.vector_store %arg8[%c0_43, %c0_44, %c0_45], %127 {strides = array<i32>} : memref<1x8x32xf32, #tpu.memory_space<vmem>>, vector<1x8x32xf32>,
    return
  }
  func.func @transform_0(%arg0: i32) -> (i32, i32, i32) {
    %c0_i32 = arith.constant 0 : i32
    %c0_i32_0 = arith.constant 0 : i32
    %c0_i32_1 = arith.constant 0 : i32
    return %arg0, %c0_i32, %c0_i32_0 : i32, i32, i32
  }
  func.func @transform_1(%arg0: i32) -> (i32, i32) {
    %c0_i32 = arith.constant 0 : i32
    %c0_i32_0 = arith.constant 0 : i32
    %c0_i32_1 = arith.constant 0 : i32
    return %c0_i32, %c0_i32_0 : i32, i32
  }
  func.func @transform_2(%arg0: i32) -> (i32, i32) {
    %c0_i32 = arith.constant 0 : i32
    %c0_i32_0 = arith.constant 0 : i32
    %c0_i32_1 = arith.constant 0 : i32
    return %c0_i32, %c0_i32_0 : i32, i32
  }
  func.func @transform_3(%arg0: i32) -> (i32, i32) {
    %c0_i32 = arith.constant 0 : i32
    %c0_i32_0 = arith.constant 0 : i32
    %c0_i32_1 = arith.constant 0 : i32
    return %c0_i32, %c0_i32_0 : i32, i32
  }
  func.func @transform_4(%arg0: i32) -> (i32, i32) {
    %c0_i32 = arith.constant 0 : i32
    %c0_i32_0 = arith.constant 0 : i32
    %c0_i32_1 = arith.constant 0 : i32
    return %c0_i32, %c0_i32_0 : i32, i32
  }
  func.func @transform_5(%arg0: i32) -> (i32, i32) {
    %c0_i32 = arith.constant 0 : i32
    %c0_i32_0 = arith.constant 0 : i32
    %c0_i32_1 = arith.constant 0 : i32
    return %c0_i32, %c0_i32_0 : i32, i32
  }
  func.func @transform_6(%arg0: i32) -> (i32, i32) {
    %c0_i32 = arith.constant 0 : i32
    %c0_i32_0 = arith.constant 0 : i32
    %c0_i32_1 = arith.constant 0 : i32
    return %c0_i32, %c0_i32_0 : i32, i32
  }
  func.func @transform_7(%arg0: i32) -> (i32, i32, i32) {
    %c0_i32 = arith.constant 0 : i32
    %c0_i32_0 = arith.constant 0 : i32
    %c0_i32_1 = arith.constant 0 : i32
    return %arg0, %c0_i32, %c0_i32_0 : i32, i32, i32
  }
}

</mosaic_0001>

<bundles_post_ra>
// kernel: tpu_custom_call.1
= control target key start
LH: loop header
LB: loop body
LE: loop exit
PB: predicated region body
PF: predicated region fallthrough
CT: control target
= control target key end

     0   :  { %12 = vsyncpa [#allocation4], 0  ;;  %s1847_s0 = inlined_call_operand.hbm [shape: f32[2,8,32], index: 0, kind: input, shape index: {}]   ;;  %s1848_s1 = inlined_call_operand.hbm [shape: bf16[32,96], index: 1, kind: input, shape index: {}]   ;;  %s1849_s2 = inlined_call_operand.vmem [shape: f32[1,96], index: 2, kind: input, shape index: {}]   ;;  %s1850_s3 = inlined_call_operand.hbm [shape: bf16[32,32], index: 3, kind: input, shape index: {}]   ;;  %s1851_s4 = inlined_call_operand.vmem [shape: f32[1,32], index: 4, kind: input, shape index: {}]   ;;  %s1852_s5 = inlined_call_operand.vmem [shape: f32[1,32], index: 5, kind: input, shape index: {}]   ;;  %s1853_s6 = inlined_call_operand.vmem [shape: f32[1,32], index: 6, kind: input, shape index: {}]   ;;  %s1854_s7 = inlined_call_operand.hbm [shape: f32[2,8,32], index: 7, kind: output, shape index: {}]  }
   0x1   :  { %14 = vsyncpa [#allocation4 + $0x1], 0 }
   0x2   :  { %15 = vsyncpa [#allocation7], 0 }
   0x3   :  { %16 = vsyncpa [#allocation5], 0 }
   0x4   :  { %18 = vsyncpa [#allocation5 + $0x1], 0  ;;  %s1522_s24 = smov 0   ;;  %s1524_s25 = smov 0  }
   0x5   :  { %s1526_s26 = smov 0   ;;  %s1528_s27 = smov 0  }
   0x6 LB: > { %s1543_s28 = sadd.s32 4294967295, %s1458_s27   ;;  %s1069_s29 = sadd.s32 4294967294, %s1458_s27   ;;  %s1458_s27 = sphi %s1528_s27, %s1874_s27   ;;  %s1454_s26 = sphi %s1526_s26, %s1873_s26   ;;  %s1450_s25 = sphi %s1524_s25, %s1872_s25   ;;  %s1446_s24 = sphi %s1522_s24, %s1871_s24  }
   0x7   : > { %p44_p0 = scmp.ne.s32.totalorder %s1450_s25, %s1446_s24  ;;  %p1855_p1 = scmp.eq.s32.totalorder %s1543_s28, 0 }
   0x8   : > { %p200_p3 = scmp.eq.s32.totalorder %s1069_s29, 1  ;;  %p1070_p5 = scmp.ge.s32.totalorder %s1458_s27, 1 }
   0x9   : > { %p1552_p4 = por %p1855_p1, %p44_p0  ;;  %p207_p7 = scmp.lt.s32.totalorder %s1458_s27, 3 }
   0xa   : > { %p1557_p6 = por %p200_p3, %p44_p0  ;;  %s1460_s10 = smov [#allocation6]  }
   0xb   : > { %s1858_s30 = scalar_select %p1552_p4, 1, 0 }
   0xc   : > { %s1859_s8 = scalar_select %p1557_p6, 1, 0 }
   0xd   : > { %p1562_p8 = pnand %p1070_p5, %p207_p7  ;;  %s219_s11 = sshll.u32 %s1460_s10, 4  ;;  %s1566_s11 = int_to_ptr.vmem [resolvable:$true] %s219_s11 }
   0xe   : > { %s1461_s13 = smov [#allocation8]   ;;  %s1302_s17 = scalar_lea.hbm %s1848_s1, 256 }
   0xf   : > { %p1207_p9 = pneg %p1562_p8  ;;  %s235_s14 = sshll.u32 %s1461_s13, 4  ;;  %s1577_s14 = int_to_ptr.vmem [resolvable:$true] %s235_s14 }
  0x10   : > { %p1303_p12 = scmp.ne.s32.totalorder %s1848_s1, %s1302_s17  ;;  %p1309_p5 = scmp.lt.u32.totalorder %s1302_s17, %s1848_s1 }
  0x11   : > { %p1573_p11 = pnand %p1207_p9, %p1855_p1 }
  0x13   : > { %p1304_p13 = pneg %p1573_p11 }
  0x15   : > { %p1305_p0 = pnand %p1304_p13, %p1303_p12 }
  0x17   : > { %p1306_p3 = pneg %p1305_p0 }
  0x19   : > { %p1311_p7 = pnand %p1309_p5, %p1306_p3 }
  0x1b   : > { %1314 = shalt.err (!%p1311_p7)
}
  0x1c   : > { %s1315_s22 = scalar_lea.vmem %s1566_s11, 256  ;;  %p1323_p2 = scmp.lt.s32.totalorder %s1566_s11, %s1566_s11 }
  0x1d   : > { %p1316_p9 = scmp.ne.s32.totalorder %s1566_s11, %s1315_s22  ;;  %p1324_p12 = scmp.lt.s32.totalorder %s1315_s22, %s1315_s22 }
  0x1f   : > { %p1318_p10 = pnand %p1316_p9, %p1304_p13  ;;  %p1325_p0 = por %p1324_p12, %p1323_p2 }
  0x21   : > { %p1319_p1 = pneg %p1318_p10 }
  0x23   : > { %p1326_p6 = pnand %p1325_p0, %p1319_p1 }
  0x25   : > { %1329 = shalt.err (!%p1326_p6)
}
  0x26   : > { %s1462_s23 = smov 64   ;;  %s1463_s29 = smov 4  }
  0x27   : > { %1210 = dma.hbm_to_vmem [thread:$0]  (!%p1573_p11), %s1848_s1, 256, %s1566_s11, [#allocation7], %s1462_s23, %s1462_s23, %s1463_s29  }
  0x28   : > { %s1330_s17 = scalar_lea.hbm %s1850_s3, 256 }
  0x29   : > { %p1331_p2 = scmp.ne.s32.totalorder %s1850_s3, %s1330_s17  ;;  %p1337_p10 = scmp.lt.u32.totalorder %s1330_s17, %s1850_s3 }
  0x2b   : > { %p1333_p1 = pnand %p1331_p2, %p1304_p13 }
  0x2d   : > { %p1334_p6 = pneg %p1333_p1 }
  0x2f   : > { %p1339_p3 = pnand %p1337_p10, %p1334_p6 }
  0x31   : > { %1342 = shalt.err (!%p1339_p3)
}
  0x32   : > { %s1343_s11 = scalar_lea.vmem %s1577_s14, 256  ;;  %p1351_p12 = scmp.lt.s32.totalorder %s1577_s14, %s1577_s14 }
  0x33   : > { %p1344_p5 = scmp.ne.s32.totalorder %s1577_s14, %s1343_s11  ;;  %p1352_p0 = scmp.lt.s32.totalorder %s1343_s11, %s1343_s11 }
  0x35   : > { %p1346_p7 = pnand %p1344_p5, %p1304_p13  ;;  %p1353_p2 = por %p1352_p0, %p1351_p12 }
  0x37   : > { %p1347_p9 = pneg %p1346_p7 }
  0x39   : > { %p1354_p1 = pnand %p1353_p2, %p1347_p9 }
  0x3b   : > { %1357 = shalt.err (!%p1354_p1)
}
  0x3c   : > { %1213 = dma.hbm_to_vmem [thread:$0]  (!%p1573_p11), %s1850_s3, 256, %s1577_s14, [#allocation7], %s1462_s23, %s1462_s23, %s1463_s29  }
  0x3d   : > { %s1632_s13 = sadd.s32 1, %s1458_s27   ;;  %s31_s12 = sadd.s32 1, %s1454_s26 }
  0x3e   : > { %s28_s15 = ssub.s32 %s1458_s27, %s1632_s13  ;;  %p38_p13 = scmp.ne.s32.totalorder %s1454_s26, %s1450_s25 }
  0x3f   : > { %p29_p6 = scmp.eq.s32.totalorder %s28_s15, 0  ;;  %p39_p10 = scmp.eq.s32.totalorder %s1458_s27, 0 }
  0x40   : > { %p1862_p3 = scmp.eq.s32.totalorder %s1543_s28, 1  ;;  %p1224_p7 = scmp.lt.s32.totalorder %s1458_s27, 2 }
  0x41   : > { %s1648_s17 = scalar_select %p29_p6, %s1454_s26, %s31_s12  }
  0x42   : > { %p1642_p5 = por %p1862_p3, %p38_p13  ;;  %p40_p9 = por %p39_p10, %p38_p13 }
  0x43   : > { %s258_s18 = sand.u32 1, %s1454_s26   ;;  %s1075_s14 = sshll.u32 %s1458_s27, 7 }
  0x44   : > { %s1863_s16 = scalar_select %p1642_p5, 1, 0 }
  0x45   : > { %s1074_s19 = sshll.u32 %s258_s18, 3  ;;  %s1655_s20 = scalar_lea.hbm %s1847_s0, %s1075_s14 }
  0x46   : > { %s262_s21 = scalar_lea.vmem [#allocation3], %s1074_s19  ;;  %p1659_p11 = pnand %p1224_p7, %p40_p9 }
  0x47   : > { %s269_s11 = sshll.u32 %s262_s21, 4  ;;  %s259_s10 = scalar_lea.sflag [#allocation4], %s258_s18  ;;  %s1657_s11 = int_to_ptr.vmem [resolvable:$true] %s269_s11 }
  0x48   : > { %s1358_s12 = scalar_lea.hbm %s1655_s20, 128  ;;  %p1360_p0 = pneg %p1659_p11 }
  0x49   : > { %p1359_p12 = scmp.ne.s32.totalorder %s1655_s20, %s1358_s12  ;;  %s1363_s14 = scalar_lea.hbm %s1847_s0, 256 }
  0x4a   : > { %p1364_p13 = scmp.lt.u32.totalorder %s1655_s20, %s1847_s0  ;;  %p1365_p6 = scmp.lt.u32.totalorder %s1363_s14, %s1358_s12 }
  0x4b   : > { %p1361_p2 = pnand %p1360_p0, %p1359_p12  ;;  %p1367_p3 = scmp.lt.u32.totalorder %s1358_s12, %s1655_s20 }
  0x4c   : > { %p1366_p10 = por %p1365_p6, %p1364_p13 }
  0x4d   : > { %p1362_p1 = pneg %p1361_p2 }
  0x4e   : > { %p1368_p7 = por %p1367_p3, %p1366_p10 }
  0x50   : > { %p1369_p9 = pnand %p1368_p7, %p1362_p1 }
  0x52   : > { %1372 = shalt.err (!%p1369_p9)
}
  0x53   : > { %s1373_s18 = scalar_lea.vmem %s1657_s11, 128  ;;  %s1464_s21 = smov [#allocation3]  }
  0x54   : > { %p1374_p12 = scmp.ne.s32.totalorder %s1657_s11, %s1373_s18  ;;  %s1378_s15 = sshll.u32 %s1464_s21, 4  ;;  %s1379_s15 = int_to_ptr.vmem [resolvable:$false] %s1378_s15 }
  0x55   : > { %s1380_s19 = scalar_lea.vmem %s1379_s15, 256  ;;  %p1381_p4 = scmp.lt.s32.totalorder %s1657_s11, %s1379_s15 }
  0x56   : > { %p1376_p2 = pnand %p1374_p12, %p1360_p0  ;;  %p1382_p13 = scmp.lt.s32.totalorder %s1380_s19, %s1373_s18 }
  0x58   : > { %p1377_p5 = pneg %p1376_p2  ;;  %p1383_p6 = por %p1382_p13, %p1381_p4 }
  0x5a   : > { %p1384_p10 = pnand %p1383_p6, %p1377_p5 }
  0x5c   : > { %1387 = shalt.err (!%p1384_p10)
}
  0x5d   : > { %1217 = dma.hbm_to_vmem [thread:$0]  (!%p1659_p11), %s1655_s20, 128, %s1657_s11, %s259_s10  }
  0x5e   : > { %278 = sbr.rel (%p1562_p8) target bundleno = 1616 (0x650), region = 48  ;;  %s1691_s12 = sand.u32 (!%p1562_p8), 1, %s1450_s25  }
  0x5f   : > { %s1077_s14 = sshll.u32 (!%p1562_p8), %s1691_s12, 3  ;;  %s281_s23 = scalar_lea.sflag (!%p1562_p8), [#allocation4], %s1691_s12 }
  0x60   : > { %s284_s29 = scalar_lea.vmem (!%p1562_p8), [#allocation3], %s1077_s14  ;;  %p1865_p4 = scmp.ne.s32.totalorder (!%p1562_p8), %s1858_s30, 0 }
  0x65   : > { %1433 = dma.done.wait (%p1865_p4), %s281_s23, 128  }
  0x66   : > { %1435 = vsyncadd (%p1865_p4), %s281_s23, 4294967168  ;;  %p1866_p5 = scmp.eq.s32.totalorder %s1543_s28, 0 }
  0x68   : > { %1437 = dma.done.wait (%p1866_p5), [#allocation7], 512   ;;  %p1867_p8 = pmov %p1866_p5 }
  0x69   : > { %v1465_v0 = vmov 0.0   ;;  %vm1466_vm0 = vmmov 0   ;;  %v1280_v1 = vld [vmem:[#allocation6] sm:$0xff]   ;;  %v1281_v2 = vld [vmem:[#allocation6 + $0x8] sm:$0xff]   ;;  %v1711_v3 = vld [vmem:[%s284_s29] sm:$0xff]  ;;  %vm349_vm1 = vcmask 261120  }
  0x6a   : > { %1439 = vsyncadd (%p1867_p8), [#allocation7], 4294966784  ;;  %1131 = vmatprep.subr.bf16.mxu0 %v1465_v0  ;;  %1135 = vmatprep.mubr.msk.bf16.mxu0 %vm1466_vm0, %v1465_v0  ;;  %v325_v4 = vpack.c.bf16 %v1711_v3, %v1711_v3  ;;  %v1081_v5 = vld [vmem:[%s1849_s2] ss:$0 sm:$0xff]  ;;  %s1467_s20 = smov 120   ;;  %s1468_s11 = smov 96  }
  0x6b   : > { %1139 = vmatprep.subr.bf16.mxu1 %v1465_v0  ;;  %1141 = vmatprep.mubr.msk.bf16.mxu1 %vm1466_vm0, %v1465_v0  ;;  %s1469_s22 = smov 80   ;;  %s1470_s10 = smov 88   ;;  %vm397_vm2 = vcmask 64512   ;;  %vm459_vm3 = vcmask 1043456   ;;  %vm506_vm4 = vcmask 60416   ;;  %vm625_vm5 = vcmask 126016  }
  0x6c   : > { %1132 = vmatpush3.bf16.msra.mxu0 %v1280_v1  ;;  %s1471_s18 = smov 72   ;;  %s1472_s21 = smov 112   ;;  %vm744_vm6 = vcmask 191616   ;;  %vm863_vm7 = vcmask 257216  }
  0x6d   : > { %1133 = vmatprep.subr.bf16.mxu0 %v1465_v0  ;;  %s1473_s15 = smov 104   ;;  %s1474_s19 = smov 56  }
  0x6e   : > { %s1475_s23 = smov 64   ;;  %s1476_s29 = smov 40  }
  0x6f   : > { %s1477_s30 = smov 48   ;;  %s1478_s9 = smov 8  }
  0x70   : > { %1134 = vmatpush3.bf16.msra.mxu0 %v1281_v2  ;;  %p1868_p0 = scmp.ne.s32.totalorder %s1863_s16, 0 }
  0x71   : > { %1145 = vmatprep.subr.bf16.mxu0 %v1465_v0 }
  0x73   : > { %1136 = vmatmul.mubr.msk.bf16.vlgmr.msra.gmra.mrb[0].mxu0 %vm349_vm1, %v325_v4 }
  0x74   : > { %1147 = vmatprep.mubr.msk.bf16.mxu0 %vm1466_vm0, %v1465_v0 }
 0x146   : > { %v387_v6 = vpop.f32.mrb[0].mxu0 }
 0x147   : > { %v388_v7 = vadd.f32 %v1081_v5, %v387_v6  ;;  %v1137_v8 = vpop.f32.mrb[1].mxu0 }
 0x148   : > { %v390_v9 = vpop.f32.mrb[2].mxu0 }
 0x149   : > { %v1723_v10 = vpack.c.bf16 %v388_v7, %v388_v7  ;;  %v1138_v11 = vpop.f32.mrb[3].mxu0 }
 0x14b   : > { %508 = vrot.lane.b32.xlu1 %v1723_v10, %s1467_s20  ;;  %395 = vrot.lane.b32.xlu0 %v1723_v10, %s1468_s11  ;;  %s1479_s20 = smov 16   ;;  %s1480_s11 = smov 24  }
 0x14f   : > { %629 = vrot.lane.b32.xlu1 %v1723_v10, %s1469_s22  ;;  %510 = vrot.lane.b32.xlu0 %v1723_v10, %s1470_s10  ;;  %s967_s22 = scalar_lea.sflag [#allocation5], %s1691_s12 }
 0x153   : > { %748 = vrot.lane.b32.xlu1 %v1723_v10, %s1471_s18  ;;  %627 = vrot.lane.b32.xlu0 %v1723_v10, %s1472_s21 }
 0x157   : > { %746 = vrot.lane.b32.xlu0 %v1723_v10, %s1473_s15 }
 0x1bd   : > { %v396_v12 = vpop.permute.xlu0 %395  ;;  %v509_v15 = vpop.permute.xlu1 %508 }
 0x1be   : > { %v402_v13 = vsel %vm397_vm2, %v396_v12, 0 }
 0x1bf   : > { %1140 = vmatpush3.bf16.xpose.msra.mxu1 %v402_v13 }
 0x1c0   : > { %1151 = vmatprep.subr.bf16.mxu1 %v1465_v0 }
 0x1c1   : > { %v511_v14 = vpop.permute.xlu0 %510  ;;  %v630_v17 = vpop.permute.xlu1 %629 }
 0x1c2   : > { %v516_v16 = vsel %vm397_vm2, %v511_v14, 0  ;;  %v635_v18 = vsel %vm397_vm2, %v630_v17, 0 }
 0x1c5   : > { %v749_v19 = vpop.permute.xlu1 %748  ;;  %v628_v20 = vpop.permute.xlu0 %627 }
 0x1c6   : > { %1142 = vmatmul.mubr.msk.bf16.vlgmr.msra.gmra.mrb[0].mxu1 %vm397_vm2, %v1723_v10  ;;  %v754_v21 = vsel %vm397_vm2, %v749_v19, 0 }
 0x1c7   : > { %1152 = vmatpush3.bf16.xpose.msra.mxu1 %v516_v16  ;;  %1153 = vmatprep.mubr.msk.bf16.mxu1 %vm1466_vm0, %v1465_v0 }
 0x1c8   : > { %1163 = vmatprep.subr.bf16.mxu1 %v1465_v0 }
 0x1c9   : > { %v747_v22 = vpop.permute.xlu0 %746 }
 0x1ce   : > { %1154 = vmatmul.mubr.msk.bf16.vlgmr.msra.gmra.mrb[4].mxu1 %vm397_vm2, %v509_v15 }
 0x1cf   : > { %1164 = vmatpush3.bf16.xpose.msra.mxu1 %v635_v18  ;;  %1165 = vmatprep.mubr.msk.bf16.mxu1 %vm1466_vm0, %v1465_v0 }
 0x1d0   : > { %1175 = vmatprep.subr.bf16.mxu1 %v1465_v0 }
 0x1d6   : > { %1166 = vmatmul.mubr.msk.bf16.vlgmr.msra.gmra.mrb[8].mxu1 %vm397_vm2, %v628_v20 }
 0x1d7   : > { %1176 = vmatpush3.bf16.xpose.msra.mxu1 %v754_v21  ;;  %1177 = vmatprep.mubr.msk.bf16.mxu1 %vm1466_vm0, %v1465_v0 }
 0x1d8   : > { %1187 = vmatprep.subr.bf16.mxu1 %v1465_v0 }
 0x1de   : > { %1178 = vmatmul.mubr.msk.bf16.vlgmr.msra.gmra.mrb[12].mxu1 %vm397_vm2, %v747_v22 }
 0x1df   : > { %1191 = vmatprep.mubr.msk.bf16.mxu1 %vm1466_vm0, %v1465_v0 }
 0x299   : > { %v438_v23 = vpop.f32.mrb[0].mxu1 }
 0x29a   : > { %v1143_v24 = vpop.f32.mrb[1].mxu1  ;;  %v444_v25 = vsel %vm397_vm2, %v438_v23, -inf }
 0x29b   : > { %445 = vmax.xlane.f32.xlu1 %v444_v25  ;;  %v441_v26 = vpop.f32.mrb[2].mxu1 }
 0x29c   : > { %v1144_v27 = vpop.f32.mrb[3].mxu1 }
 0x2a1   : > { %v552_v28 = vpop.f32.mrb[4].mxu1 }
 0x2a2   : > { %v1155_v29 = vpop.f32.mrb[5].mxu1  ;;  %v558_v30 = vsel %vm397_vm2, %v552_v28, -inf }
 0x2a3   : > { %559 = vmax.xlane.f32.xlu0 %v558_v30  ;;  %v555_v31 = vpop.f32.mrb[6].mxu1 }
 0x2a4   : > { %v1156_v32 = vpop.f32.mrb[7].mxu1 }
 0x2a9   : > { %v671_v33 = vpop.f32.mrb[8].mxu1 }
 0x2aa   : > { %v1167_v34 = vpop.f32.mrb[9].mxu1  ;;  %v677_v35 = vsel %vm397_vm2, %v671_v33, -inf }
 0x2ab   : > { %678 = vmax.xlane.f32.xlu0 %v677_v35  ;;  %v674_v36 = vpop.f32.mrb[10].mxu1 }
 0x2ac   : > { %568 = vrot.lane.b32.xlu1 %v1723_v10, %s1474_s19  ;;  %v1168_v37 = vpop.f32.mrb[11].mxu1 }
 0x2ad   : > { %v1283_v37 = vld [vmem:[#allocation8 + $0x8] sm:$0xff]  }
 0x2b1   : > { %v790_v38 = vpop.f32.mrb[12].mxu1 }
 0x2b2   : > { %v1179_v39 = vpop.f32.mrb[13].mxu1  ;;  %v796_v42 = vsel %vm397_vm2, %v790_v38, -inf }
 0x2b3   : > { %v793_v40 = vpop.f32.mrb[14].mxu1 }
 0x2b4   : > { %v1180_v41 = vpop.f32.mrb[15].mxu1 }
 0x2c1   : > { %454 = vrot.lane.b32.xlu0 %v1723_v10, %s1475_s23  ;;  %s1103_s23 = sshll.u32 %s1543_s28, 7  ;;  %s1481_s28 = smov [#allocation9]  }
 0x2c5   : > { %806 = vrot.lane.b32.xlu0 %v1723_v10, %s1476_s29  ;;  %s322_s29 = scalar_lea.vmem [#allocation9], %s1077_s14  ;;  %s1392_s14 = sshll.u32 %s1481_s28, 4  ;;  %s1393_s14 = int_to_ptr.vmem [resolvable:$false] %s1392_s14 }
 0x2c6   : > { %s1394_s18 = scalar_lea.vmem %s1393_s14, 256 }
 0x2d0   : > { %797 = vmax.xlane.f32.xlu1 %v796_v42 }
 0x2e1   : > { %687 = vrot.lane.b32.xlu1 %v1723_v10, %s1477_s30  ;;  %s980_s30 = sshll.u32 %s322_s29, 4  ;;  %s1804_s30 = int_to_ptr.vmem [resolvable:$true] %s980_s30 }
 0x2e2   : > { %s1388_s10 = scalar_lea.vmem %s1804_s30, 128  ;;  %p1395_p7 = scmp.lt.s32.totalorder %s1804_s30, %s1393_s14 }
 0x2e3   : > { %p1389_p11 = scmp.ne.s32.totalorder %s1804_s30, %s1388_s10  ;;  %p1396_p9 = scmp.lt.s32.totalorder %s1394_s18, %s1388_s10 }
 0x2e5   : > { %p1390_p1 = pnand %p1389_p11, %p1868_p0  ;;  %p1397_p12 = por %p1396_p9, %p1395_p7 }
 0x2e7   : > { %p1391_p3 = pneg %p1390_p1 }
 0x2e9   : > { %p1398_p2 = pnand %p1397_p12, %p1391_p3 }
 0x328   : > { %v446_v43 = vpop.xlane.xlu1 %445 }
 0x329   : > { %v447_v44 = vsub.f32 %v438_v23, %v446_v43 }
 0x32b   : > { %v448_v45 = vmul.f32 1.442695, %v447_v44 }
 0x32c   : > { %v569_v55 = vpop.permute.xlu1 %568 }
 0x32d   : > { %1284 = vpow2.f32 %v448_v45  ;;  %v574_v59 = vsel %vm459_vm3, %v569_v55, 0 }
 0x330   : > { %v560_v46 = vpop.xlane.xlu0 %559 }
 0x331   : > { %v561_v47 = vsub.f32 %v552_v28, %v560_v46 }
 0x333   : > { %v562_v48 = vmul.f32 1.442695, %v561_v47 }
 0x335   : > { %1286 = vpow2.f32 %v562_v48 }
 0x337   : > { %v1285_v52 = vpop.eup %1284 }
 0x338   : > { %v679_v49 = vpop.xlane.xlu0 %678  ;;  %v453_v57 = vpack.c.bf16 %v1285_v52, %v1285_v52  ;;  %v450_v60 = vsel %vm397_vm2, %v1285_v52, 0.0 }
 0x339   : > { %v680_v50 = vsub.f32 %v671_v33, %v679_v49  ;;  %v1282_v33 = vld [vmem:[#allocation8] sm:$0xff]  }
 0x33a   : > { %1188 = vmatpush3.bf16.msra.mxu1 %v1282_v33 }
 0x33b   : > { %v681_v51 = vmul.f32 1.442695, %v680_v50  ;;  %1189 = vmatprep.subr.bf16.mxu1 %v1465_v0  ;;  %v1096_v50 = vld [vmem:[%s1851_s4] ss:$0 sm:$0xff] }
 0x33c   : > { %v455_v53 = vpop.permute.xlu0 %454 }
 0x33d   : > { %1288 = vpow2.f32 %v681_v51  ;;  %v461_v54 = vsel %vm459_vm3, %v455_v53, 0 }
 0x33e   : > { %1146 = vmatpush3.bf16.msra.mxu0 %v461_v54  ;;  %1190 = vmatpush3.bf16.msra.mxu1 %v1283_v37 }
 0x33f   : > { %v1287_v56 = vpop.eup %1286  ;;  %1157 = vmatprep.subr.bf16.mxu0 %v1465_v0 }
 0x340   : > { %v564_v58 = vsel %vm397_vm2, %v1287_v56, 0.0  ;;  %v567_v62 = vpack.c.bf16 %v1287_v56, %v1287_v56  ;;  %v807_v7 = vpop.permute.xlu0 %806 }
 0x341   : > { %565 = vadd.xlane.f32.xlu1 %v564_v58  ;;  %1148 = vmatmul.mubr.msk.bf16.vlgmr.msra.gmra.mrb[4].mxu0 %vm397_vm2, %v453_v57  ;;  %v812_v9 = vsel %vm459_vm3, %v807_v7, 0 }
 0x342   : > { %1158 = vmatpush3.bf16.msra.mxu0 %v574_v59  ;;  %1159 = vmatprep.mubr.msk.bf16.mxu0 %vm1466_vm0, %v1465_v0 }
 0x343   : > { %1169 = vmatprep.subr.bf16.mxu0 %v1465_v0 }
 0x345   : > { %451 = vadd.xlane.f32.xlu1 %v450_v60 }
 0x347   : > { %v1289_v61 = vpop.eup %1288 }
 0x348   : > { %v683_v63 = vsel %vm397_vm2, %v1289_v61, 0.0  ;;  %v686_v8 = vpack.c.bf16 %v1289_v61, %v1289_v61 }
 0x349   : > { %684 = vadd.xlane.f32.xlu0 %v683_v63  ;;  %1160 = vmatmul.mubr.msk.bf16.vlgmr.msra.gmra.mrb[8].mxu0 %vm397_vm2, %v567_v62 }
 0x34a   : > { %1171 = vmatprep.mubr.msk.bf16.mxu0 %vm1466_vm0, %v1465_v0 }
 0x35d   : > { %v798_v1 = vpop.xlane.xlu1 %797 }
 0x35e   : > { %v799_v2 = vsub.f32 %v790_v38, %v798_v1 }
 0x360   : > { %v800_v4 = vmul.f32 1.442695, %v799_v2 }
 0x361   : > { %v688_v5 = vpop.permute.xlu1 %687 }
 0x362   : > { %1290 = vpow2.f32 %v800_v4  ;;  %v693_v6 = vsel %vm459_vm3, %v688_v5, 0 }
 0x363   : > { %1170 = vmatpush3.bf16.msra.mxu0 %v693_v6  ;;  %v1100_v6 = vld [vmem:[%s1852_s5] ss:$0 sm:$0xff] }
 0x364   : > { %1181 = vmatprep.subr.bf16.mxu0 %v1465_v0 }
 0x366   : > { %1172 = vmatmul.mubr.msk.bf16.vlgmr.msra.gmra.mrb[12].mxu0 %vm397_vm2, %v686_v8  ;;  %v1101_v8 = vld [vmem:[%s1853_s6] ss:$0 sm:$0xff] }
 0x367   : > { %1182 = vmatpush3.bf16.msra.mxu0 %v812_v9  ;;  %1183 = vmatprep.mubr.msk.bf16.mxu0 %vm1466_vm0, %v1465_v0 }
 0x36c   : > { %v1291_v10 = vpop.eup %1290 }
 0x36d   : > { %v802_v11 = vsel %vm397_vm2, %v1291_v10, 0.0  ;;  %v805_v12 = vpack.c.bf16 %v1291_v10, %v1291_v10 }
 0x36e   : > { %803 = vadd.xlane.f32.xlu0 %v802_v11 }
 0x36f   : > { %1184 = vmatmul.mubr.msk.bf16.vlgmr.msra.gmra.mrb[16].mxu0 %vm397_vm2, %v805_v12 }
 0x3ce   : > { %v566_v13 = vpop.xlane.xlu1 %565 }
 0x3d2   : > { %v452_v14 = vpop.xlane.xlu1 %451 }
 0x3d3   : > { %1292 = vrcp.f32 %v452_v14 }
 0x3d4   : > { %1294 = vrcp.f32 %v566_v13 }
 0x3d6   : > { %v685_v29 = vpop.xlane.xlu0 %684 }
 0x3d7   : > { %1296 = vrcp.f32 %v685_v29 }
 0x3dd   : > { %v1293_v15 = vpop.eup %1292 }
 0x3de   : > { %v1295_v22 = vpop.eup %1294 }
 0x3e1   : > { %v1297_v31 = vpop.eup %1296 }
 0x3fb   : > { %v804_v30 = vpop.xlane.xlu0 %803 }
 0x3fc   : > { %1298 = vrcp.f32 %v804_v30 }
 0x406   : > { %v1299_v40 = vpop.eup %1298 }
 0x414   : > { %v497_v16 = vpop.f32.mrb[4].mxu0 }
 0x415   : > { %v504_v17 = vmul.f32 %v1293_v15, %v497_v16  ;;  %v1149_v18 = vpop.f32.mrb[5].mxu0 }
 0x416   : > { %v500_v19 = vpop.f32.mrb[6].mxu0 }
 0x417   : > { %v505_v20 = vpack.c.bf16 %v504_v17, %v504_v17  ;;  %v1150_v21 = vpop.f32.mrb[7].mxu0 }
 0x419   : > { %507 = vst.msk [vmem:[#allocation2] sm:$0xf] %vm506_vm4, %v505_v20 }
 0x41c   : > { %v610_v23 = vpop.f32.mrb[8].mxu0 }
 0x41d   : > { %v617_v24 = vmul.f32 %v1295_v22, %v610_v23  ;;  %v1161_v25 = vpop.f32.mrb[9].mxu0 }
 0x41e   : > { %v613_v26 = vpop.f32.mrb[10].mxu0 }
 0x41f   : > { %v1106_v27 = vpack.c.bf16 %v617_v24, %v617_v24  ;;  %v1162_v28 = vpop.f32.mrb[11].mxu0 }
 0x421   : > { %622 = vrot.lane.b32.xlu0 %v1106_v27, %s1478_s9 }
 0x439   : > { %v729_v32 = vpop.f32.mrb[12].mxu0 }
 0x43a   : > { %v736_v34 = vmul.f32 %v1297_v31, %v729_v32  ;;  %v1173_v35 = vpop.f32.mrb[13].mxu0 }
 0x43b   : > { %v732_v36 = vpop.f32.mrb[14].mxu0 }
 0x43c   : > { %v1107_v38 = vpack.c.bf16 %v736_v34, %v736_v34  ;;  %v1174_v39 = vpop.f32.mrb[15].mxu0 }
 0x43e   : > { %741 = vrot.lane.b32.xlu1 %v1107_v38, %s1479_s20 }
 0x442   : > { %v848_v41 = vpop.f32.mrb[16].mxu0 }
 0x443   : > { %v855_v42 = vmul.f32 %v1299_v40, %v848_v41  ;;  %v1185_v43 = vpop.f32.mrb[17].mxu0 }
 0x444   : > { %v851_v44 = vpop.f32.mrb[18].mxu0 }
 0x445   : > { %v1108_v45 = vpack.c.bf16 %v855_v42, %v855_v42  ;;  %v1186_v46 = vpop.f32.mrb[19].mxu0 }
 0x447   : > { %860 = vrot.lane.b32.xlu1 %v1108_v45, %s1480_s11  ;;  %s1802_s11 = scalar_lea.hbm %s1854_s7, %s1103_s23 }
 0x493   : > { %v623_v47 = vpop.permute.xlu0 %622 }
 0x494   : > { %626 = vst.msk [vmem:[#allocation2] sm:$0xf] %vm625_vm5, %v623_v47 }
 0x4b0   : > { %v742_v48 = vpop.permute.xlu1 %741 }
 0x4b1   : > { %745 = vst.msk [vmem:[#allocation2] sm:$0xf] %vm744_vm6, %v742_v48 }
 0x4b9   : > { %v861_v0 = vpop.permute.xlu1 %860 }
 0x4ba   : > { %864 = vst.msk [vmem:[#allocation2] sm:$0xf] %vm863_vm7, %v861_v0 }
 0x4c1   : > { %v865_v49 = vld [vmem:[#allocation2] sm:$0xf] }
 0x4c2   : > { %1192 = vmatmul.mubr.msk.bf16.vlgmr.msra.gmra.mrb[16].mxu1 %vm349_vm1, %v865_v49 }
 0x595   : > { %v926_v51 = vpop.f32.mrb[16].mxu1 }
 0x596   : > { %v927_v52 = vadd.f32 %v1096_v50, %v926_v51  ;;  %v1193_v53 = vpop.f32.mrb[17].mxu1 }
 0x597   : > { %v929_v54 = vpop.f32.mrb[18].mxu1 }
 0x598   : > { %v932_v55 = vadd.f32 %v927_v52, %v1711_v3  ;;  %v1194_v56 = vpop.f32.mrb[19].mxu1 }
 0x59a   : > { %v933_v57 = vsel %vm349_vm1, %v932_v55, 0.0  ;;  %v938_v58 = vmul.f32 %v932_v55, %v932_v55 }
 0x59b   : > { %934 = vadd.xlane.f32.xlu0 %v933_v57 }
 0x59c   : > { %v939_v59 = vsel %vm349_vm1, %v938_v58, 0.0 }
 0x59d   : > { %940 = vadd.xlane.f32.xlu1 %v939_v59 }
 0x628   : > { %v935_v60 = vpop.xlane.xlu0 %934 }
 0x629   : > { %v937_v61 = vmul.f32 0.03125, %v935_v60 }
 0x62a   : > { %v941_v62 = vpop.xlane.xlu1 %940 }
 0x62b   : > { %v943_v63 = vmul.f32 %v937_v61, %v937_v61  ;;  %v942_v1 = vmul.f32 0.03125, %v941_v62  ;;  %v945_v3 = vsub.f32 %v932_v55, %v937_v61 }
 0x62d   : > { %v944_v2 = vsub.f32 %v942_v1, %v943_v63 }
 0x62f   : > { %v946_v4 = vadd.f32 1e-05, %v944_v2 }
 0x631   : > { %1300 = vrsqrt.f32 %v946_v4 }
 0x63b   : > { %v1301_v5 = vpop.eup %1300 }
 0x63c   : > { %v948_v7 = vmul.f32 %v1301_v5, %v945_v3 }
 0x63e   : > { %v956_v9 = vmul.f32 %v1100_v6, %v948_v7 }
 0x640   : > { %v964_v10 = vadd.f32 %v1101_v8, %v956_v9 }
 0x642   : > { %965 = vst.msk [vmem:[%s322_s29] sm:$0xff] %vm349_vm1, %v964_v10 }
 0x643   : > { %1401 = shalt.err (!%p1398_p2)
}
 0x644   : > { %s1402_s12 = scalar_lea.hbm %s1802_s11, 128  ;;  %s1406_s19 = scalar_lea.hbm %s1854_s7, 256 }
 0x645   : > { %p1403_p13 = scmp.ne.s32.totalorder %s1802_s11, %s1402_s12  ;;  %p1407_p4 = scmp.lt.u32.totalorder %s1802_s11, %s1854_s7 }
 0x646   : > { %p1408_p5 = scmp.lt.u32.totalorder %s1406_s19, %s1402_s12  ;;  %p1410_p11 = scmp.lt.u32.totalorder %s1402_s12, %s1802_s11 }
 0x647   : > { %p1404_p6 = pnand %p1403_p13, %p1868_p0 }
 0x648   : > { %p1409_p8 = por %p1408_p5, %p1407_p4 }
 0x649   : > { %p1405_p10 = pneg %p1404_p6 }
 0x64a   : > { %p1411_p1 = por %p1410_p11, %p1409_p8 }
 0x64c   : > { %p1412_p3 = pnand %p1411_p1, %p1405_p10 }
 0x64e   : > { %1415 = shalt.err (!%p1412_p3)
}
 0x64f   : > { %1205 = dma.vmem_to_hbm [thread:$0]  (%p1868_p0), %s1804_s30, 128, %s1802_s11, %s967_s22  }
 0x650 PF: > { %s992_s9 = sand.u32 1, %s1446_s24   ;;  %p1869_p7 = scmp.ne.s32.totalorder %s1859_s8, 0 }
 0x651   : > { %p1870_p9 = scmp.ge.s32.totalorder %s1458_s27, 2  ;;  %s993_s20 = scalar_lea.sflag [#allocation5], %s992_s9 }
 0x653   : > { %p1219_p12 = pnand %p1870_p9, %p1869_p7 }
 0x655   : > { %1441 = dma.done.wait (!%p1219_p12), %s993_s20, 128  }
 0x656   : > { %1443 = vsyncadd (!%p1219_p12), %s993_s20, 4294967168  ;;  %p21_p2 = scmp.ge.s32.totalorder %s1632_s13, 4   ;;  %s1871_s24 = smov %s1450_s25 }
 0x657   : > { %s1872_s25 = smov %s1454_s26  ;;  %s1873_s26 = smov %s1648_s17 }
 0x658   : > { %s1874_s27 = smov %s1632_s13  ;;  %23 = sbr.rel (!%p21_p2) target bundleno = 6 (0x6), region = 101 }
 0x65f   :  { %998 = vsyncpa [#allocation4], 1 }
 0x660   :  { %1000 = vsyncpa [#allocation4 + $0x1], 1 }
 0x661   :  { %1001 = vsyncpa [#allocation7], 1 }
 0x662   :  { %1002 = vsyncpa [#allocation5], 1 }
 0x663   :  { %1004 = vsyncpa [#allocation5 + $0x1], 1 }

</bundles_post_ra>
